<compile_context>
chip_gen: v7x
topology: tpu7x:2x2x1
jax: 0.10.0
libtpu: 0.0.40
codegen_flags: <defaults>
</compile_context>

<pallas_src>
import numpy as np
import jax
import jax.numpy as jnp
from jax.experimental import pallas as pl
from jax.experimental.pallas import tpu as pltpu


def _round_up(x, m):
    return (x + m - 1) // m * m


# ----------------------------------------------------------------------------
# Pallas kernel: one (TILE_M, Dp) row tile of the tree-GRU cell
# ----------------------------------------------------------------------------
def _tree_gru_kernel(hl_ref, hr_ref,
                     wl_ref, wr_ref, b1_ref,
                     w2l_ref, w2r_ref, b2_ref,
                     o_ref):
    hl = hl_ref[...]                      # (TM, Dp) f32
    hr = hr_ref[...]
    hl_b = hl.astype(jnp.bfloat16)
    hr_b = hr.astype(jnp.bfloat16)

    # fc1 on cat([hl, hr]) -> one wide (TM, 3*Dp) result = [i | f | r].
    # Two accumulating MXU dots instead of six narrow per-gate dots.
    gates = (jnp.dot(hl_b, wl_ref[...], preferred_element_type=jnp.float32)
             + jnp.dot(hr_b, wr_ref[...], preferred_element_type=jnp.float32)
             + b1_ref[...])

    dp = o_ref.shape[-1]                  # Dp, a multiple of 128
    i_g = gates[:, 0:dp]
    f_g = gates[:, dp:2 * dp]
    r_g = gates[:, 2 * dp:3 * dp]

    r_s = jax.nn.sigmoid(r_g)

    # fc2 on cat([hl * sigmoid(r), hr * sigmoid(r)]).
    h_hat = (jnp.dot((hl * r_s).astype(jnp.bfloat16), w2l_ref[...],
                     preferred_element_type=jnp.float32)
             + jnp.dot((hr * r_s).astype(jnp.bfloat16), w2r_ref[...],
                       preferred_element_type=jnp.float32)
             + b2_ref[...])

    o_ref[...] = ((hl + hr) * jax.nn.sigmoid(f_g)
                  + jnp.tanh(h_hat) * jax.nn.sigmoid(i_g)).astype(o_ref.dtype)


# ----------------------------------------------------------------------------
# Wrapper: pad to lane-aligned shapes, tile rows, single compiled pallas_call
# ----------------------------------------------------------------------------
def binary_tree_gru_forward(params, hl, hr, *, tile_m=256):
    """hl, hr: (B, L, D) float32 -> h: (B, L, D) float32."""
    B, L, D = hl.shape
    Dp = params["wl"].shape[0]            # padded hidden (multiple of 128)
    M = B * L
    tm = min(tile_m, _round_up(M, 8))
    Mp = _round_up(M, tm)

    def pad_rows(x):
        x2 = x.reshape(M, D)
        return jnp.pad(x2, ((0, Mp - M), (0, Dp - D)))

    hl2 = pad_rows(hl)
    hr2 = pad_rows(hr)

    row_spec = pl.BlockSpec((tm, Dp), lambda i: (i, 0))

    def full(a):  # whole array, same block every grid step -> stays VMEM-resident
        return pl.BlockSpec(a.shape, lambda i, n=a.ndim: (0,) * n)

    out = pl.pallas_call(
        _tree_gru_kernel,
        grid=(Mp // tm,),
        in_specs=[row_spec, row_spec,
                  full(params["wl"]), full(params["wr"]), full(params["b1"]),
                  full(params["w2l"]), full(params["w2r"]), full(params["b2"])],
        out_specs=pl.BlockSpec((tm, Dp), lambda i: (i, 0)),
        out_shape=jax.ShapeDtypeStruct((Mp, Dp), jnp.float32),
        compiler_params=pltpu.CompilerParams(
            dimension_semantics=("parallel",),
            vmem_limit_bytes=32 * 1024 * 1024),
    )(hl2, hr2, params["wl"], params["wr"], params["b1"],
      params["w2l"], params["w2r"], params["b2"])

    return out[:M, :D].reshape(B, L, D)


# ----------------------------------------------------------------------------
# Parameter init + packing into the padded / gate-concatenated kernel layout
# ----------------------------------------------------------------------------
def init_params(key, hidden_dim, lane=128):
    D = hidden_dim
    Dp = _round_up(D, lane)
    k1, k2, k3, k4 = jax.random.split(key, 4)
    std = 0.1

    # Logical (torch-equivalent) parameters, kept for the pure-JAX reference.
    w1 = (std * jax.random.normal(k1, (2 * D, 3 * D))).astype(jnp.float32)  # fc1.weight.T
    b1 = (std * jax.random.normal(k2, (3 * D,))).astype(jnp.float32)
    w2 = (std * jax.random.normal(k3, (2 * D, D))).astype(jnp.float32)      # fc2.weight.T
    b2 = (std * jax.random.normal(k4, (D,))).astype(jnp.float32)

    # Pack fc1 halves into (Dp, 3*Dp) with per-gate 128-lane alignment:
    # torch.chunk order along the 3D axis is [i, f, r].
    def pack_fc1(half):                    # half: (D, 3D)
        out = np.zeros((Dp, 3 * Dp), np.float32)
        for g in range(3):
            out[:D, g * Dp:g * Dp + D] = half[:, g * D:(g + 1) * D]
        return out

    w1_np = np.asarray(w1)
    wl = pack_fc1(w1_np[:D])
    wr = pack_fc1(w1_np[D:])
    b1p = np.zeros((1, 3 * Dp), np.float32)
    b1_np = np.asarray(b1)
    for g in range(3):
        b1p[0, g * Dp:g * Dp + D] = b1_np[g * D:(g + 1) * D]

    w2_np = np.asarray(w2)
    w2l = np.zeros((Dp, Dp), np.float32); w2l[:D, :D] = w2_np[:D]
    w2r = np.zeros((Dp, Dp), np.float32); w2r[:D, :D] = w2_np[D:]
    b2p = np.zeros((1, Dp), np.float32);  b2p[0, :D] = np.asarray(b2)

    params = dict(
        wl=jnp.asarray(wl, jnp.bfloat16), wr=jnp.asarray(wr, jnp.bfloat16),
        b1=jnp.asarray(b1p, jnp.float32),
        w2l=jnp.asarray(w2l, jnp.bfloat16), w2r=jnp.asarray(w2r, jnp.bfloat16),
        b2=jnp.asarray(b2p, jnp.float32),
    )
    raw = dict(w1=w1, b1=b1, w2=w2, b2=b2)
    return params, raw


# ----------------------------------------------------------------------------
# Pure-JAX f32 reference (mirrors the torch forward exactly)
# ----------------------------------------------------------------------------
def binary_tree_gru_ref(raw, hl, hr):
    D = hl.shape[-1]
    cat1 = jnp.concatenate([hl, hr], axis=-1)
    v = cat1 @ raw["w1"] + raw["b1"]
    i, f, r = v[..., :D], v[..., D:2 * D], v[..., 2 * D:]
    r_s = jax.nn.sigmoid(r)
    cat2 = jnp.concatenate([hl * r_s, hr * r_s], axis=-1)
    h_hat = cat2 @ raw["w2"] + raw["b2"]
    return (hl + hr) * jax.nn.sigmoid(f) + jnp.tanh(h_hat) * jax.nn.sigmoid(i)


if __name__ == "__main__":
    key = jax.random.PRNGKey(0)
    B, L, D = 2, 8, 32
    pkey, k_hl, k_hr = jax.random.split(key, 3)

    params, raw = init_params(pkey, D)
    hl = jax.random.normal(k_hl, (B, L, D), dtype=jnp.float32)
    hr = jax.random.normal(k_hr, (B, L, D), dtype=jnp.float32)

    out = binary_tree_gru_forward(params, hl, hr)
    jax.block_until_ready(out)
    assert out.shape == (B, L, D)

    # Numerical check against the f32 reference (kernel uses bf16 MXU operands,
    # f32 accumulation and f32 element-wise math -> small tolerance).
    ref = binary_tree_gru_ref(raw, hl, hr)
    err = float(jnp.max(jnp.abs(out - ref)))
    assert err < 6e-2, f"max abs error too large: {err}"

    print("KERNEL_OK")
</pallas_src>

<mosaic_0001>
module attributes {stable_mosaic.version = 11 : i64} {
  func.func @_tree_gru_kernel(%arg0: i32, %arg1: memref<16x128xf32, #tpu.memory_space<vmem>>, %arg2: memref<16x128xf32, #tpu.memory_space<vmem>>, %arg3: memref<128x384xbf16, #tpu.memory_space<vmem>>, %arg4: memref<128x384xbf16, #tpu.memory_space<vmem>>, %arg5: memref<1x384xf32, #tpu.memory_space<vmem>>, %arg6: memref<128x128xbf16, #tpu.memory_space<vmem>>, %arg7: memref<128x128xbf16, #tpu.memory_space<vmem>>, %arg8: memref<1x128xf32, #tpu.memory_space<vmem>>, %arg9: memref<16x128xf32, #tpu.memory_space<vmem>>) attributes {dimension_semantics = [#tpu.dimension_semantics<parallel>], iteration_bounds = array<i64: 1>, scalar_prefetch = 0 : i64, scratch_operands = 0 : i64, tpu.core_type = #tpu.core_type<tc>, window_params = [{transform_indices = @transform_0, window_bounds = array<i64: 16, 128>}, {transform_indices = @transform_1, window_bounds = array<i64: 16, 128>}, {pipeline_mode = #tpu.pipeline_mode<synchronous>, transform_indices = @transform_2, window_bounds = array<i64: 128, 384>}, {pipeline_mode = #tpu.pipeline_mode<synchronous>, transform_indices = @transform_3, window_bounds = array<i64: 128, 384>}, {pipeline_mode = #tpu.pipeline_mode<synchronous>, transform_indices = @transform_4, window_bounds = array<i64: 1, 384>}, {pipeline_mode = #tpu.pipeline_mode<synchronous>, transform_indices = @transform_5, window_bounds = array<i64: 128, 128>}, {pipeline_mode = #tpu.pipeline_mode<synchronous>, transform_indices = @transform_6, window_bounds = array<i64: 128, 128>}, {pipeline_mode = #tpu.pipeline_mode<synchronous>, transform_indices = @transform_7, window_bounds = array<i64: 1, 128>}, {transform_indices = @transform_8, window_bounds = array<i64: 16, 128>}]} {
    %c0 = arith.constant 0 : index
    %c0_0 = arith.constant 0 : index
    %0 = vector.load %arg1[%c0, %c0_0] : memref<16x128xf32, #tpu.memory_space<vmem>>, vector<16x128xf32>
    %c0_1 = arith.constant 0 : index
    %c0_2 = arith.constant 0 : index
    %1 = vector.load %arg2[%c0_1, %c0_2] : memref<16x128xf32, #tpu.memory_space<vmem>>, vector<16x128xf32>
    %2 = arith.truncf %0 : vector<16x128xf32> to vector<16x128xbf16>
    %3 = arith.truncf %1 : vector<16x128xf32> to vector<16x128xbf16>
    %c0_3 = arith.constant 0 : index
    %c0_4 = arith.constant 0 : index
    %4 = vector.load %arg3[%c0_3, %c0_4] : memref<128x384xbf16, #tpu.memory_space<vmem>>, vector<128x384xbf16>
    %cst = arith.constant dense<0.000000e+00> : vector<16x384xf32>
    %5 = tpu.matmul %2, %4, %cst {dimension_numbers = #tpu.dot_dimension_numbers<[1], [0], [0], [1], [0, 0, 1, 1], [], []>} : vector<16x128xbf16>, vector<128x384xbf16>, vector<16x384xf32> -> vector<16x384xf32>
    %c0_5 = arith.constant 0 : index
    %c0_6 = arith.constant 0 : index
    %6 = vector.load %arg4[%c0_5, %c0_6] : memref<128x384xbf16, #tpu.memory_space<vmem>>, vector<128x384xbf16>
    %cst_7 = arith.constant dense<0.000000e+00> : vector<16x384xf32>
    %7 = tpu.matmul %3, %6, %cst_7 {dimension_numbers = #tpu.dot_dimension_numbers<[1], [0], [0], [1], [0, 0, 1, 1], [], []>} : vector<16x128xbf16>, vector<128x384xbf16>, vector<16x384xf32> -> vector<16x384xf32>
    %8 = arith.addf %5, %7 : vector<16x384xf32>
    %c0_8 = arith.constant 0 : index
    %c0_9 = arith.constant 0 : index
    %9 = vector.load %arg5[%c0_8, %c0_9] : memref<1x384xf32, #tpu.memory_space<vmem>>, vector<1x384xf32>
    %10 = vector.broadcast %9 : vector<1x384xf32> to vector<16x384xf32>
    %11 = arith.addf %8, %10 : vector<16x384xf32>
    %12 = vector.extract_strided_slice %11 {offsets = [0, 0], sizes = [16, 128], strides = [1, 1]} : vector<16x384xf32> to vector<16x128xf32>
    %13 = vector.extract_strided_slice %11 {offsets = [0, 128], sizes = [16, 128], strides = [1, 1]} : vector<16x384xf32> to vector<16x128xf32>
    %14 = vector.extract_strided_slice %11 {offsets = [0, 256], sizes = [16, 128], strides = [1, 1]} : vector<16x384xf32> to vector<16x128xf32>
    %15 = arith.negf %14 : vector<16x128xf32>
    %16 = math.exp %15 : vector<16x128xf32>
    %cst_10 = arith.constant 1.000000e+00 : f32
    %17 = vector.broadcast %cst_10 : f32 to vector<16x128xf32>
    %18 = arith.addf %17, %16 : vector<16x128xf32>
    %19 = arith.divf %17, %18 : vector<16x128xf32>
    %20 = arith.mulf %0, %19 : vector<16x128xf32>
    %21 = arith.truncf %20 : vector<16x128xf32> to vector<16x128xbf16>
    %c0_11 = arith.constant 0 : index
    %c0_12 = arith.constant 0 : index
    %22 = vector.load %arg6[%c0_11, %c0_12] : memref<128x128xbf16, #tpu.memory_space<vmem>>, vector<128x128xbf16>
    %cst_13 = arith.constant dense<0.000000e+00> : vector<16x128xf32>
    %23 = tpu.matmul %21, %22, %cst_13 {dimension_numbers = #tpu.dot_dimension_numbers<[1], [0], [0], [1], [0, 0, 1, 1], [], []>} : vector<16x128xbf16>, vector<128x128xbf16>, vector<16x128xf32> -> vector<16x128xf32>
    %24 = arith.mulf %1, %19 : vector<16x128xf32>
    %25 = arith.truncf %24 : vector<16x128xf32> to vector<16x128xbf16>
    %c0_14 = arith.constant 0 : index
    %c0_15 = arith.constant 0 : index
    %26 = vector.load %arg7[%c0_14, %c0_15] : memref<128x128xbf16, #tpu.memory_space<vmem>>, vector<128x128xbf16>
    %cst_16 = arith.constant dense<0.000000e+00> : vector<16x128xf32>
    %27 = tpu.matmul %25, %26, %cst_16 {dimension_numbers = #tpu.dot_dimension_numbers<[1], [0], [0], [1], [0, 0, 1, 1], [], []>} : vector<16x128xbf16>, vector<128x128xbf16>, vector<16x128xf32> -> vector<16x128xf32>
    %28 = arith.addf %23, %27 : vector<16x128xf32>
    %c0_17 = arith.constant 0 : index
    %c0_18 = arith.constant 0 : index
    %29 = vector.load %arg8[%c0_17, %c0_18] : memref<1x128xf32, #tpu.memory_space<vmem>>, vector<1x128xf32>
    %30 = vector.broadcast %29 : vector<1x128xf32> to vector<16x128xf32>
    %31 = arith.addf %28, %30 : vector<16x128xf32>
    %32 = arith.addf %0, %1 : vector<16x128xf32>
    %33 = arith.negf %13 : vector<16x128xf32>
    %34 = math.exp %33 : vector<16x128xf32>
    %cst_19 = arith.constant 1.000000e+00 : f32
    %35 = vector.broadcast %cst_19 : f32 to vector<16x128xf32>
    %36 = arith.addf %35, %34 : vector<16x128xf32>
    %37 = arith.divf %35, %36 : vector<16x128xf32>
    %38 = arith.mulf %32, %37 : vector<16x128xf32>
    %39 = math.tanh %31 : vector<16x128xf32>
    %40 = arith.negf %12 : vector<16x128xf32>
    %41 = math.exp %40 : vector<16x128xf32>
    %cst_20 = arith.constant 1.000000e+00 : f32
    %42 = vector.broadcast %cst_20 : f32 to vector<16x128xf32>
    %43 = arith.addf %42, %41 : vector<16x128xf32>
    %44 = arith.divf %42, %43 : vector<16x128xf32>
    %45 = arith.mulf %39, %44 : vector<16x128xf32>
    %46 = arith.addf %38, %45 : vector<16x128xf32>
    %c0_21 = arith.constant 0 : index
    %c0_22 = arith.constant 0 : index
    %47 = vector.load %arg9[%c0_21, %c0_22] : memref<16x128xf32, #tpu.memory_space<vmem>>, vector<16x128xf32>
    tpu.vector_store %arg9[%c0_21, %c0_22], %46 {strides = array<i32>} : memref<16x128xf32, #tpu.memory_space<vmem>>, vector<16x128xf32>,
    return
  }
  func.func @transform_0(%arg0: i32) -> (i32, i32) {
    %c0_i32 = arith.constant 0 : i32
    %c0_i32_0 = arith.constant 0 : i32
    return %arg0, %c0_i32 : i32, i32
  }
  func.func @transform_1(%arg0: i32) -> (i32, i32) {
    %c0_i32 = arith.constant 0 : i32
    %c0_i32_0 = arith.constant 0 : i32
    return %arg0, %c0_i32 : i32, i32
  }
  func.func @transform_2(%arg0: i32) -> (i32, i32) {
    %c0_i32 = arith.constant 0 : i32
    %c0_i32_0 = arith.constant 0 : i32
    %c0_i32_1 = arith.constant 0 : i32
    return %c0_i32, %c0_i32_0 : i32, i32
  }
  func.func @transform_3(%arg0: i32) -> (i32, i32) {
    %c0_i32 = arith.constant 0 : i32
    %c0_i32_0 = arith.constant 0 : i32
    %c0_i32_1 = arith.constant 0 : i32
    return %c0_i32, %c0_i32_0 : i32, i32
  }
  func.func @transform_4(%arg0: i32) -> (i32, i32) {
    %c0_i32 = arith.constant 0 : i32
    %c0_i32_0 = arith.constant 0 : i32
    %c0_i32_1 = arith.constant 0 : i32
    return %c0_i32, %c0_i32_0 : i32, i32
  }
  func.func @transform_5(%arg0: i32) -> (i32, i32) {
    %c0_i32 = arith.constant 0 : i32
    %c0_i32_0 = arith.constant 0 : i32
    %c0_i32_1 = arith.constant 0 : i32
    return %c0_i32, %c0_i32_0 : i32, i32
  }
  func.func @transform_6(%arg0: i32) -> (i32, i32) {
    %c0_i32 = arith.constant 0 : i32
    %c0_i32_0 = arith.constant 0 : i32
    %c0_i32_1 = arith.constant 0 : i32
    return %c0_i32, %c0_i32_0 : i32, i32
  }
  func.func @transform_7(%arg0: i32) -> (i32, i32) {
    %c0_i32 = arith.constant 0 : i32
    %c0_i32_0 = arith.constant 0 : i32
    %c0_i32_1 = arith.constant 0 : i32
    return %c0_i32, %c0_i32_0 : i32, i32
  }
  func.func @transform_8(%arg0: i32) -> (i32, i32) {
    %c0_i32 = arith.constant 0 : i32
    %c0_i32_0 = arith.constant 0 : i32
    return %arg0, %c0_i32 : i32, i32
  }
}

</mosaic_0001>

<bundles_post_ra>
// kernel: tpu_custom_call.1
= control target key start
LH: loop header
LB: loop body
LE: loop exit
PB: predicated region body
PF: predicated region fallthrough
CT: control target
= control target key end

     0   :  { %13 = vsyncpa [#allocation3], 0  ;;  %s1630_s0 = inlined_call_operand.hbm [shape: f32[16,128], index: 0, kind: input, shape index: {}]   ;;  %s1631_s1 = inlined_call_operand.hbm [shape: f32[16,128], index: 1, kind: input, shape index: {}]   ;;  %s1632_s2 = inlined_call_operand.hbm [shape: bf16[128,384], index: 2, kind: input, shape index: {}]   ;;  %s1633_s3 = inlined_call_operand.hbm [shape: bf16[128,384], index: 3, kind: input, shape index: {}]   ;;  %s1634_s4 = inlined_call_operand.vmem [shape: f32[1,384], index: 4, kind: input, shape index: {}]   ;;  %s1635_s5 = inlined_call_operand.hbm [shape: bf16[128,128], index: 5, kind: input, shape index: {}]   ;;  %s1636_s6 = inlined_call_operand.hbm [shape: bf16[128,128], index: 6, kind: input, shape index: {}]   ;;  %s1637_s7 = inlined_call_operand.vmem [shape: f32[1,128], index: 7, kind: input, shape index: {}]   ;;  %s1638_s8 = inlined_call_operand.hbm [shape: f32[16,128], index: 8, kind: output, shape index: {}]  }
   0x1   :  { %14 = vsyncpa [#allocation6], 0 }
   0x2   :  { %15 = vsyncpa [#allocation9], 0 }
   0x3   :  { %16 = vsyncpa [#allocation12], 0 }
   0x4   :  { %17 = vsyncpa [#allocation4], 0  ;;  %s1402_s27 = smov [#allocation5]   ;;  %s1238_s9 = scalar_lea.hbm %s1631_s1, 256 }
   0x5   :  { %s35_s28 = sshll.u32 %s1402_s27, 4  ;;  %p1239_p0 = scmp.ne.s32.totalorder %s1631_s1, %s1238_s9  ;;  %s36_s28 = int_to_ptr.vmem [resolvable:$true] %s35_s28 }
   0x6   :  { %p1242_p1 = scmp.lt.u32.totalorder %s1238_s9, %s1631_s1 }
   0x8   :  { %p1244_p2 = pnand %p1242_p1, %p1239_p0 }
   0xa   :  { %1247 = shalt.err (!%p1244_p2)
}
   0xb   :  { %s1248_s14 = scalar_lea.vmem %s36_s28, 256  ;;  %p1253_p4 = scmp.lt.s32.totalorder %s36_s28, %s36_s28 }
   0xc   :  { %p1249_p3 = scmp.ne.s32.totalorder %s36_s28, %s1248_s14  ;;  %p1254_p5 = scmp.lt.s32.totalorder %s1248_s14, %s1248_s14 }
   0xe   :  { %p1255_p6 = por %p1254_p5, %p1253_p4 }
  0x10   :  { %p1256_p7 = pnand %p1255_p6, %p1249_p3 }
  0x12   :  { %1259 = shalt.err (!%p1256_p7)
}
  0x13   :  { %s1403_s15 = smov 128   ;;  %s1404_s16 = smov 8  }
  0x14   :  { %41 = dma.hbm_to_vmem [thread:$0]  %s1631_s1, 256, %s36_s28, [#allocation6], %s1403_s15, %s1403_s15, %s1404_s16  }
  0x15   :  { %s1405_s19 = smov [#allocation8]   ;;  %s1406_s21 = smov [#allocation2]  }
  0x16   :  { %s59_s20 = sshll.u32 %s1405_s19, 4  ;;  %s23_s22 = sshll.u32 %s1406_s21, 4  ;;  %s60_s20 = int_to_ptr.vmem [resolvable:$true] %s59_s20  ;;  %s24_s22 = int_to_ptr.vmem [resolvable:$true] %s23_s22 }
  0x17   :  { %s1260_s25 = scalar_lea.hbm %s1633_s3, 3072 }
  0x18   :  { %p1261_p8 = scmp.ne.s32.totalorder %s1633_s3, %s1260_s25  ;;  %p1264_p9 = scmp.lt.u32.totalorder %s1260_s25, %s1633_s3 }
  0x1a   :  { %p1266_p10 = pnand %p1264_p9, %p1261_p8 }
  0x1c   :  { %1269 = shalt.err (!%p1266_p10)
}
  0x1d   :  { %s1270_s1 = scalar_lea.vmem %s60_s20, 3072  ;;  %p1275_p12 = scmp.lt.s32.totalorder %s60_s20, %s60_s20 }
  0x1e   :  { %p1271_p11 = scmp.ne.s32.totalorder %s60_s20, %s1270_s1  ;;  %p1276_p13 = scmp.lt.s32.totalorder %s1270_s1, %s1270_s1 }
  0x20   :  { %p1277_p0 = por %p1276_p13, %p1275_p12 }
  0x22   :  { %p1278_p1 = pnand %p1277_p0, %p1271_p11 }
  0x24   :  { %1281 = shalt.err (!%p1278_p1)
}
  0x25   :  { %s1407_s28 = smov 192   ;;  %s1408_s9 = smov 12  }
  0x26   :  { %65 = dma.hbm_to_vmem [thread:$0]  %s1633_s3, 3072, %s60_s20, [#allocation9], %s1407_s28, %s1407_s28, %s1408_s9  }
  0x27   :  { %s1282_s14 = scalar_lea.hbm %s1630_s0, 256 }
  0x28   :  { %p1283_p2 = scmp.ne.s32.totalorder %s1630_s0, %s1282_s14  ;;  %p1286_p3 = scmp.lt.u32.totalorder %s1282_s14, %s1630_s0 }
  0x2a   :  { %p1288_p4 = pnand %p1286_p3, %p1283_p2 }
  0x2c   :  { %1291 = shalt.err (!%p1288_p4)
}
  0x2d   :  { %s1292_s23 = scalar_lea.vmem %s24_s22, 256  ;;  %p1297_p6 = scmp.lt.s32.totalorder %s24_s22, %s24_s22 }
  0x2e   :  { %p1293_p5 = scmp.ne.s32.totalorder %s24_s22, %s1292_s23  ;;  %p1298_p7 = scmp.lt.s32.totalorder %s1292_s23, %s1292_s23 }
  0x30   :  { %p1299_p8 = por %p1298_p7, %p1297_p6 }
  0x32   :  { %p1300_p9 = pnand %p1299_p8, %p1293_p5 }
  0x34   :  { %1303 = shalt.err (!%p1300_p9)
}
  0x35   :  { %29 = dma.hbm_to_vmem [thread:$0]  %s1630_s0, 256, %s24_s22, [#allocation3], %s1403_s15, %s1403_s15, %s1404_s16  }
  0x36   :  { %s1409_s24 = smov [#allocation7]   ;;  %s1410_s26 = smov [#allocation10]  }
  0x37   :  { %s47_s25 = sshll.u32 %s1409_s24, 4  ;;  %s73_s27 = sshll.u32 %s1410_s26, 4  ;;  %s48_s25 = int_to_ptr.vmem [resolvable:$true] %s47_s25  ;;  %s74_s27 = int_to_ptr.vmem [resolvable:$true] %s73_s27 }
  0x38   :  { %s1304_s1 = scalar_lea.hbm %s1632_s2, 3072 }
  0x39   :  { %p1305_p10 = scmp.ne.s32.totalorder %s1632_s2, %s1304_s1  ;;  %p1308_p11 = scmp.lt.u32.totalorder %s1304_s1, %s1632_s2 }
  0x3b   :  { %p1310_p12 = pnand %p1308_p11, %p1305_p10 }
  0x3d   :  { %1313 = shalt.err (!%p1310_p12)
}
  0x3e   :  { %s1314_s0 = scalar_lea.vmem %s48_s25, 3072  ;;  %p1319_p0 = scmp.lt.s32.totalorder %s48_s25, %s48_s25 }
  0x3f   :  { %p1315_p13 = scmp.ne.s32.totalorder %s48_s25, %s1314_s0  ;;  %p1320_p1 = scmp.lt.s32.totalorder %s1314_s0, %s1314_s0 }
  0x41   :  { %p1321_p2 = por %p1320_p1, %p1319_p0 }
  0x43   :  { %p1322_p3 = pnand %p1321_p2, %p1315_p13 }
  0x45   :  { %1325 = shalt.err (!%p1322_p3)
}
  0x46   :  { %53 = dma.hbm_to_vmem [thread:$0]  %s1632_s2, 3072, %s48_s25, [#allocation6], %s1407_s28, %s1407_s28, %s1408_s9  }
  0x47   :  { %s1326_s19 = scalar_lea.hbm %s1635_s5, 1024 }
  0x48   :  { %p1327_p4 = scmp.ne.s32.totalorder %s1635_s5, %s1326_s19  ;;  %p1330_p5 = scmp.lt.u32.totalorder %s1326_s19, %s1635_s5 }
  0x4a   :  { %p1332_p6 = pnand %p1330_p5, %p1327_p4 }
  0x4c   :  { %1335 = shalt.err (!%p1332_p6)
}
  0x4d   :  { %s1336_s24 = scalar_lea.vmem %s74_s27, 1024  ;;  %p1341_p8 = scmp.lt.s32.totalorder %s74_s27, %s74_s27 }
  0x4e   :  { %p1337_p7 = scmp.ne.s32.totalorder %s74_s27, %s1336_s24  ;;  %p1342_p9 = scmp.lt.s32.totalorder %s1336_s24, %s1336_s24 }
  0x50   :  { %p1343_p10 = por %p1342_p9, %p1341_p8 }
  0x52   :  { %p1344_p11 = pnand %p1343_p10, %p1337_p7 }
  0x54   :  { %1347 = shalt.err (!%p1344_p11)
}
  0x55   :  { %s1411_s2 = smov 64   ;;  %s1412_s28 = smov 4  }
  0x56   :  { %79 = dma.hbm_to_vmem [thread:$0]  %s1635_s5, 1024, %s74_s27, [#allocation9], %s1411_s2, %s1411_s2, %s1412_s28  }
  0x57   :  { %s1413_s26 = smov [#allocation11]   ;;  %s1348_s10 = scalar_lea.hbm %s1636_s6, 1024 }
  0x58   :  { %s85_s29 = sshll.u32 %s1413_s26, 4  ;;  %p1349_p12 = scmp.ne.s32.totalorder %s1636_s6, %s1348_s10  ;;  %s86_s29 = int_to_ptr.vmem [resolvable:$true] %s85_s29 }
  0x59   :  { %p1352_p13 = scmp.lt.u32.totalorder %s1348_s10, %s1636_s6 }
  0x5b   :  { %p1354_p0 = pnand %p1352_p13, %p1349_p12 }
  0x5d   :  { %1357 = shalt.err (!%p1354_p0)
}
  0x5e   :  { %s1358_s22 = scalar_lea.vmem %s86_s29, 1024  ;;  %p1363_p2 = scmp.lt.s32.totalorder %s86_s29, %s86_s29 }
  0x5f   :  { %p1359_p1 = scmp.ne.s32.totalorder %s86_s29, %s1358_s22  ;;  %p1364_p3 = scmp.lt.s32.totalorder %s1358_s22, %s1358_s22 }
  0x61   :  { %p1365_p4 = por %p1364_p3, %p1363_p2 }
  0x63   :  { %p1366_p5 = pnand %p1365_p4, %p1359_p1 }
  0x65   :  { %1369 = shalt.err (!%p1366_p5)
}
  0x66   :  { %91 = dma.hbm_to_vmem [thread:$0]  %s1636_s6, 1024, %s86_s29, [#allocation12], %s1411_s2, %s1411_s2, %s1412_s28  }
  0x67   :  { %1392 = dma.done.wait [#allocation3], 256  }
  0x68   :  { %1393 = vsyncadd [#allocation3], 4294967040 }
  0x69   :  { %1394 = dma.done.wait [#allocation6], 3328  }
  0x6a   :  { %1395 = vsyncadd [#allocation6], 4294963968 }
  0x6b   :  { %1396 = dma.done.wait [#allocation9], 4096  }
  0x6c   :  { %1397 = vsyncadd [#allocation9], 4294963200 }
  0x6d   :  { %1398 = dma.done.wait [#allocation12], 1024  }
  0x6e   :  { %1399 = vsyncadd [#allocation12], 4294966272  ;;  %v1414_v0 = vmov 0.0   ;;  %vm1415_vm0 = vmmov 0   ;;  %v1416_v1 = vmov 0   ;;  %v1557_v15 = vld [vmem:[#allocation5] sm:$0xff] }
  0x6f   :  { %1030 = vmatprep.subr.bf16.mxu1 %v1414_v0  ;;  %1046 = vmatprep.mubr.msk.bf16.mxu1 %vm1415_vm0, %v1414_v0  ;;  %v1130_v2 = vld [vmem:[#allocation8 + $0x8] ss:$12 sps:$4 sm:$0xff]   ;;  %v1131_v3 = vld [vmem:[#allocation8 + $0x20] ss:$12 sps:$4 sm:$0xff]   ;;  %v1132_v4 = vld [vmem:[#allocation8 + $0x38] ss:$12 sps:$4 sm:$0xff]  }
  0x70   :  { %343 = vmatprep.mubr.bf16.mxu0 %v1416_v1  ;;  %1031 = vmatpush3.bf16.msra.mxu1 %v1130_v2  ;;  %v1133_v5 = vld [vmem:[#allocation8 + $0x50] ss:$12 sps:$4 sm:$0xff]   ;;  %v1134_v6 = vld [vmem:[#allocation8 + $0x68] ss:$12 sps:$4 sm:$0xff]   ;;  %v1135_v7 = vld [vmem:[#allocation8 + $0x80] ss:$12 sps:$4 sm:$0xff]  }
  0x71   :  { %1032 = vmatprep.subr.bf16.mxu1 %v1414_v0  ;;  %v1146_v8 = vld [vmem:[#allocation8 + $0x4] ss:$12 sps:$4 sm:$0xff]   ;;  %v1148_v9 = vld [vmem:[#allocation8] ss:$12 sps:$4 sm:$0xff]   ;;  %v1149_v10 = vld [vmem:[#allocation8 + $0x1c] ss:$12 sps:$4 sm:$0xff]  }
  0x72   :  { %311 = vmatprep.subr.bf16.mxu0 %v1146_v8  ;;  %v1151_v11 = vld [vmem:[#allocation8 + $0x18] ss:$12 sps:$4 sm:$0xff]   ;;  %v1152_v13 = vld [vmem:[#allocation8 + $0x34] ss:$12 sps:$4 sm:$0xff]   ;;  %v1137_v14 = vld [vmem:[#allocation8 + $0xb0] ss:$12 sps:$4 sm:$0xff]  }
  0x73   :  { %312 = vmatpush1.bf16.msra.mxu0 %v1148_v9  ;;  %v1136_v12 = vld [vmem:[#allocation8 + $0x98] ss:$12 sps:$4 sm:$0xff]   ;;  %v1154_v16 = vld [vmem:[#allocation8 + $0x30] ss:$12 sps:$4 sm:$0xff]   ;;  %v1157_v20 = vld [vmem:[#allocation8 + $0x48] ss:$12 sps:$4 sm:$0xff]   ;;  %v609_v9 = vlaneseq }
  0x74   :  { %1033 = vmatpush3.bf16.msra.mxu1 %v1131_v3  ;;  %313 = vmatprep.subr.bf16.mxu0 %v1149_v10  ;;  %v1559_v17 = vld [vmem:[#allocation5 + $0x8] sm:$0xff]  ;;  %v1138_v21 = vld [vmem:[#allocation7 + $0x8] ss:$12 sps:$4 sm:$0xff]   ;;  %v1158_v22 = vld [vmem:[#allocation8 + $0x64] ss:$12 sps:$4 sm:$0xff]  }
  0x75   :  { %1034 = vmatprep.subr.bf16.mxu1 %v1414_v0  ;;  %v1155_v18 = vld [vmem:[#allocation8 + $0x4c] ss:$12 sps:$4 sm:$0xff]   ;;  %v118_v19 = vpack.c.bf16 %v1559_v17, %v1557_v15  ;;  %v1161_v25 = vld [vmem:[#allocation8 + $0x7c] ss:$12 sps:$4 sm:$0xff]   ;;  %v1164_v28 = vld [vmem:[#allocation8 + $0x94] ss:$12 sps:$4 sm:$0xff]  }
  0x76   :  { %v1160_v23 = vld [vmem:[#allocation8 + $0x60] ss:$12 sps:$4 sm:$0xff]   ;;  %v1163_v26 = vld [vmem:[#allocation8 + $0x78] ss:$12 sps:$4 sm:$0xff]   ;;  %v1166_v29 = vld [vmem:[#allocation8 + $0x90] ss:$12 sps:$4 sm:$0xff]  }
  0x77   :  { %314 = vmatpush1.bf16.msra.mxu0 %v1151_v11  ;;  %v1139_v24 = vld [vmem:[#allocation7 + $0x20] ss:$12 sps:$4 sm:$0xff]   ;;  %v1140_v27 = vld [vmem:[#allocation7 + $0x38] ss:$12 sps:$4 sm:$0xff]   ;;  %v1141_v30 = vld [vmem:[#allocation7 + $0x50] ss:$12 sps:$4 sm:$0xff]  }
  0x78   :  { %1035 = vmatpush3.bf16.msra.mxu1 %v1132_v4  ;;  %315 = vmatprep.subr.bf16.mxu0 %v1152_v13  ;;  %v1167_v31 = vld [vmem:[#allocation8 + $0xac] ss:$12 sps:$4 sm:$0xff]   ;;  %v1169_v32 = vld [vmem:[#allocation8 + $0xa8] ss:$12 sps:$4 sm:$0xff]   ;;  %v1172_v34 = vld [vmem:[#allocation7 + $0x4] ss:$12 sps:$4 sm:$0xff]  }
  0x79   :  { %1036 = vmatprep.subr.bf16.mxu1 %v1414_v0  ;;  %v1142_v33 = vld [vmem:[#allocation7 + $0x68] ss:$12 sps:$4 sm:$0xff]   ;;  %v1170_v35 = vld [vmem:[#allocation7] ss:$12 sps:$4 sm:$0xff]   ;;  %v1173_v38 = vld [vmem:[#allocation7 + $0x18] ss:$12 sps:$4 sm:$0xff]  }
  0x7a   :  { %v1143_v36 = vld [vmem:[#allocation7 + $0x80] ss:$12 sps:$4 sm:$0xff]   ;;  %v1175_v37 = vld [vmem:[#allocation7 + $0x1c] ss:$12 sps:$4 sm:$0xff]   ;;  %v1144_v39 = vld [vmem:[#allocation7 + $0x98] ss:$12 sps:$4 sm:$0xff]  }
  0x7b   :  { %316 = vmatpush1.bf16.msra.mxu0 %v1154_v16  ;;  %v1178_v40 = vld [vmem:[#allocation7 + $0x34] ss:$12 sps:$4 sm:$0xff]   ;;  %v1176_v42 = vld [vmem:[#allocation7 + $0x30] ss:$12 sps:$4 sm:$0xff]   ;;  %v1576_v43 = vld [vmem:[#allocation2 + $0x8] sm:$0xff]  ;;  %v610_v10 = vshrl.u32 %v609_v9, 7 }
  0x7c   :  { %1037 = vmatpush3.bf16.msra.mxu1 %v1133_v5  ;;  %317 = vmatprep.subr.bf16.mxu0 %v1155_v18  ;;  %v1574_v41 = vld [vmem:[#allocation2] sm:$0xff]  ;;  %v1145_v44 = vld [vmem:[#allocation7 + $0xb0] ss:$12 sps:$4 sm:$0xff]   ;;  %v1181_v45 = vld [vmem:[#allocation7 + $0x4c] ss:$12 sps:$4 sm:$0xff]  }
  0x7d   :  { %1038 = vmatprep.subr.bf16.mxu1 %v1414_v0  ;;  %v117_v46 = vpack.c.bf16 %v1576_v43, %v1574_v41  ;;  %v1179_v47 = vld [vmem:[#allocation7 + $0x48] ss:$12 sps:$4 sm:$0xff]   ;;  %v1184_v48 = vld [vmem:[#allocation7 + $0x64] ss:$12 sps:$4 sm:$0xff]   ;;  %v1182_v49 = vld [vmem:[#allocation7 + $0x60] ss:$12 sps:$4 sm:$0xff]  }
  0x7e   :  { %v1187_v50 = vld [vmem:[#allocation7 + $0x7c] ss:$12 sps:$4 sm:$0xff]   ;;  %v1185_v51 = vld [vmem:[#allocation7 + $0x78] ss:$12 sps:$4 sm:$0xff]   ;;  %v1190_v52 = vld [vmem:[#allocation7 + $0x94] ss:$12 sps:$4 sm:$0xff]  }
  0x7f   :  { %318 = vmatpush1.bf16.msra.mxu0 %v1157_v20  ;;  %v1188_v53 = vld [vmem:[#allocation7 + $0x90] ss:$12 sps:$4 sm:$0xff]   ;;  %v1193_v54 = vld [vmem:[#allocation7 + $0xac] ss:$12 sps:$4 sm:$0xff]   ;;  %v1191_v55 = vld [vmem:[#allocation7 + $0xa8] ss:$12 sps:$4 sm:$0xff]  }
  0x80   :  { %1039 = vmatpush3.bf16.msra.mxu1 %v1134_v6  ;;  %319 = vmatprep.subr.bf16.mxu0 %v1158_v22  ;;  %v1194_v56 = vld [vmem:[#allocation11] sm:$0xff]   ;;  %v1196_v58 = vld [vmem:[#allocation11 + $0x8] sm:$0xff]   ;;  %v1198_v60 = vld [vmem:[#allocation11 + $0x10] sm:$0xff]   ;;  %v611_v11 = vsub.s32 0, %v610_v10  ;;  %v619_v22 = vsub.s32 2, %v610_v10 }
  0x81   :  { %1040 = vmatprep.subr.bf16.mxu1 %v1414_v0  ;;  %v1195_v57 = vld [vmem:[#allocation10] sm:$0xff]   ;;  %v1197_v59 = vld [vmem:[#allocation10 + $0x8] sm:$0xff]   ;;  %v1199_v61 = vld [vmem:[#allocation10 + $0x10] sm:$0xff]  }
  0x82   :  { %v1200_v62 = vld [vmem:[#allocation11 + $0x18] sm:$0xff]   ;;  %v1203_v2 = vld [vmem:[#allocation10 + $0x20] sm:$0xff]   ;;  %v1204_v3 = vld [vmem:[#allocation11 + $0x28] sm:$0xff]  }
  0x83   :  { %320 = vmatpush1.bf16.msra.mxu0 %v1160_v23  ;;  %v1201_v63 = vld [vmem:[#allocation10 + $0x18] sm:$0xff]   ;;  %v1205_v4 = vld [vmem:[#allocation10 + $0x28] sm:$0xff]   ;;  %v1206_v5 = vld [vmem:[#allocation11 + $0x30] sm:$0xff]  }
  0x84   :  { %1041 = vmatpush3.bf16.msra.mxu1 %v1135_v7  ;;  %321 = vmatprep.subr.bf16.mxu0 %v1161_v25  ;;  %v1207_v6 = vld [vmem:[#allocation10 + $0x30] sm:$0xff]   ;;  %v1208_v7 = vld [vmem:[#allocation11 + $0x38] sm:$0xff]   ;;  %v607_v13 = vld [vmem:[%s1634_s4] sm:$0x7] }
  0x85   :  { %1042 = vmatprep.subr.bf16.mxu1 %v1414_v0  ;;  %v1209_v8 = vld [vmem:[#allocation10 + $0x38] sm:$0xff]   ;;  %v620_v23 = vrot.slane %v607_v13, %v619_v22 }
  0x87   :  { %322 = vmatpush1.bf16.msra.mxu0 %v1163_v26 }
  0x88   :  { %1043 = vmatpush3.bf16.msra.mxu1 %v1136_v12  ;;  %323 = vmatprep.subr.bf16.mxu0 %v1164_v28  ;;  %v615_v12 = vsub.s32 1, %v610_v10 }
  0x89   :  { %1044 = vmatprep.subr.bf16.mxu1 %v1414_v0 }
  0x8a   :  { %v616_v16 = vrot.slane %v607_v13, %v615_v12 }
  0x8b   :  { %324 = vmatpush1.bf16.msra.mxu0 %v1166_v29 }
  0x8c   :  { %1045 = vmatpush3.bf16.msra.mxu1 %v1137_v14  ;;  %325 = vmatprep.subr.bf16.mxu0 %v1167_v31  ;;  %v612_v14 = vrot.slane %v607_v13, %v611_v11 }
  0x8d   :  { %1050 = vmatprep.subr.bf16.mxu1 %v1414_v0 }
  0x8f   :  { %1047 = vmatmul.mubr.bf16.vlgmr.msra.gmra.mrb[0].mxu1 %v118_v19  ;;  %326 = vmatpush1.bf16.msra.mxu0 %v1169_v32 }
  0x90   :  { %1051 = vmatpush3.bf16.msra.mxu1 %v1138_v21  ;;  %1066 = vmatprep.mubr.msk.bf16.mxu1 %vm1415_vm0, %v1414_v0 }
  0x91   :  { %1052 = vmatprep.subr.bf16.mxu1 %v1414_v0  ;;  %523 = vmatprep.subr.bf16.mxu0 %v1172_v34 }
  0x92   :  { %344 = vmatmul.mubr.bf16.vlgmr.msra.gmra.mrb[0].mxu0 %v118_v19 }
  0x93   :  { %524 = vmatpush1.bf16.msra.mxu0 %v1170_v35  ;;  %555 = vmatprep.mubr.bf16.mxu0 %v1416_v1  ;;  %v1202_v1 = vld [vmem:[#allocation11 + $0x20] sm:$0xff]  }
  0x94   :  { %1053 = vmatpush3.bf16.msra.mxu1 %v1139_v24  ;;  %525 = vmatprep.subr.bf16.mxu0 %v1175_v37 }
  0x95   :  { %1054 = vmatprep.subr.bf16.mxu1 %v1414_v0 }
  0x97   :  { %526 = vmatpush1.bf16.msra.mxu0 %v1173_v38 }
  0x98   :  { %1055 = vmatpush3.bf16.msra.mxu1 %v1140_v27  ;;  %527 = vmatprep.subr.bf16.mxu0 %v1178_v40 }
  0x99   :  { %1056 = vmatprep.subr.bf16.mxu1 %v1414_v0 }
  0x9b   :  { %528 = vmatpush1.bf16.msra.mxu0 %v1176_v42 }
  0x9c   :  { %1057 = vmatpush3.bf16.msra.mxu1 %v1141_v30  ;;  %529 = vmatprep.subr.bf16.mxu0 %v1181_v45 }
  0x9d   :  { %1058 = vmatprep.subr.bf16.mxu1 %v1414_v0 }
  0x9f   :  { %530 = vmatpush1.bf16.msra.mxu0 %v1179_v47 }
  0xa0   :  { %1059 = vmatpush3.bf16.msra.mxu1 %v1142_v33  ;;  %531 = vmatprep.subr.bf16.mxu0 %v1184_v48 }
  0xa1   :  { %1060 = vmatprep.subr.bf16.mxu1 %v1414_v0 }
  0xa3   :  { %532 = vmatpush1.bf16.msra.mxu0 %v1182_v49 }
  0xa4   :  { %1061 = vmatpush3.bf16.msra.mxu1 %v1143_v36  ;;  %533 = vmatprep.subr.bf16.mxu0 %v1187_v50 }
  0xa5   :  { %1062 = vmatprep.subr.bf16.mxu1 %v1414_v0 }
  0xa7   :  { %534 = vmatpush1.bf16.msra.mxu0 %v1185_v51 }
  0xa8   :  { %1063 = vmatpush3.bf16.msra.mxu1 %v1144_v39  ;;  %535 = vmatprep.subr.bf16.mxu0 %v1190_v52 }
  0xa9   :  { %1064 = vmatprep.subr.bf16.mxu1 %v1414_v0 }
  0xab   :  { %536 = vmatpush1.bf16.msra.mxu0 %v1188_v53 }
  0xac   :  { %1065 = vmatpush3.bf16.msra.mxu1 %v1145_v44  ;;  %537 = vmatprep.subr.bf16.mxu0 %v1193_v54 }
  0xad   :  { %1090 = vmatprep.subr.bf16.mxu1 %v1414_v0 }
  0xaf   :  { %1067 = vmatmul.mubr.bf16.vlgmr.msra.gmra.mrb[4].mxu1 %v117_v46  ;;  %538 = vmatpush1.bf16.msra.mxu0 %v1191_v55 }
  0xb0   :  { %1106 = vmatprep.mubr.msk.bf16.mxu1 %vm1415_vm0, %v1414_v0  ;;  %1070 = vmatprep.subr.bf16.mxu0 %v1414_v0 }
  0xb1   :  { %1091 = vmatpush3.bf16.msra.mxu1 %v1195_v57 }
  0xb2   :  { %556 = vmatmul.mubr.bf16.vlgmr.msra.gmra.mrb[0].mxu0 %v117_v46  ;;  %1092 = vmatprep.subr.bf16.mxu1 %v1414_v0 }
  0xb3   :  { %1086 = vmatprep.mubr.msk.bf16.mxu0 %vm1415_vm0, %v1414_v0  ;;  %1071 = vmatpush3.bf16.msra.mxu0 %v1194_v56 }
  0xb4   :  { %1072 = vmatprep.subr.bf16.mxu0 %v1414_v0 }
  0xb5   :  { %1093 = vmatpush3.bf16.msra.mxu1 %v1197_v59 }
  0xb6   :  { %1094 = vmatprep.subr.bf16.mxu1 %v1414_v0 }
  0xb7   :  { %1073 = vmatpush3.bf16.msra.mxu0 %v1196_v58 }
  0xb8   :  { %1074 = vmatprep.subr.bf16.mxu0 %v1414_v0 }
  0xb9   :  { %1095 = vmatpush3.bf16.msra.mxu1 %v1199_v61 }
  0xba   :  { %1096 = vmatprep.subr.bf16.mxu1 %v1414_v0 }
  0xbb   :  { %1075 = vmatpush3.bf16.msra.mxu0 %v1198_v60 }
  0xbc   :  { %1076 = vmatprep.subr.bf16.mxu0 %v1414_v0 }
  0xbd   :  { %1097 = vmatpush3.bf16.msra.mxu1 %v1201_v63 }
  0xbe   :  { %1098 = vmatprep.subr.bf16.mxu1 %v1414_v0 }
  0xbf   :  { %1077 = vmatpush3.bf16.msra.mxu0 %v1200_v62 }
  0xc0   :  { %1078 = vmatprep.subr.bf16.mxu0 %v1414_v0 }
  0xc1   :  { %1099 = vmatpush3.bf16.msra.mxu1 %v1203_v2 }
  0xc2   :  { %1100 = vmatprep.subr.bf16.mxu1 %v1414_v0 }
  0xc3   :  { %1079 = vmatpush3.bf16.msra.mxu0 %v1202_v1 }
  0xc4   :  { %1080 = vmatprep.subr.bf16.mxu0 %v1414_v0 }
  0xc5   :  { %1101 = vmatpush3.bf16.msra.mxu1 %v1205_v4 }
  0xc6   :  { %1102 = vmatprep.subr.bf16.mxu1 %v1414_v0 }
  0xc7   :  { %1081 = vmatpush3.bf16.msra.mxu0 %v1204_v3 }
  0xc8   :  { %1082 = vmatprep.subr.bf16.mxu0 %v1414_v0 }
  0xc9   :  { %1103 = vmatpush3.bf16.msra.mxu1 %v1207_v6 }
  0xca   :  { %1104 = vmatprep.subr.bf16.mxu1 %v1414_v0 }
  0xcb   :  { %1083 = vmatpush3.bf16.msra.mxu0 %v1206_v5  ;;  %v989_v5 = vld [vmem:[%s1637_s7] ss:$0 sm:$0xff]  ;;  %s1417_s7 = smov [#allocation13]  }
  0xcc   :  { %1084 = vmatprep.subr.bf16.mxu0 %v1414_v0  ;;  %s908_s18 = sshll.u32 %s1417_s7, 4  ;;  %s909_s18 = int_to_ptr.vmem [resolvable:$true] %s908_s18 }
  0xcd   :  { %1105 = vmatpush3.bf16.msra.mxu1 %v1209_v8  ;;  %s1370_s19 = scalar_lea.vmem %s909_s18, 256  ;;  %p1375_p7 = scmp.lt.s32.totalorder %s909_s18, %s909_s18 }
  0xce   :  { %p1371_p6 = scmp.ne.s32.totalorder %s909_s18, %s1370_s19  ;;  %p1376_p8 = scmp.lt.s32.totalorder %s1370_s19, %s1370_s19 }
  0xcf   :  { %1085 = vmatpush3.bf16.msra.mxu0 %v1208_v7 }
  0xd0   :  { %p1377_p9 = por %p1376_p8, %p1375_p7 }
  0xd2   :  { %p1378_p10 = pnand %p1377_p9, %p1371_p6 }
 0x162   :  { %v388_v18 = vpop.f32.mrb[0].mxu1 }
 0x163   :  { %v1048_v19 = vpop.f32.mrb[1].mxu1 }
 0x164   :  { %v391_v20 = vpop.f32.mrb[2].mxu1 }
 0x165   :  { %v1049_v21 = vpop.f32.mrb[3].mxu1 }
 0x182   :  { %v600_v24 = vpop.f32.mrb[4].mxu1 }
 0x183   :  { %v601_v25 = vadd.f32 %v600_v24, %v388_v18  ;;  %v1068_v0 = vpop.f32.mrb[5].mxu1 }
 0x184   :  { %v603_v26 = vpop.f32.mrb[6].mxu1 }
 0x185   :  { %v626_v27 = vadd.f32 %v620_v23, %v601_v25  ;;  %v604_v28 = vadd.f32 %v603_v26, %v391_v20  ;;  %v1069_v29 = vpop.f32.mrb[7].mxu1  ;;  %v557_v36 = vpop.f32.mrb[0].mxu0  ;;  %v867_v20 = vadd.f32 %v1557_v15, %v1574_v41 }
 0x186   :  { %v624_v38 = vadd.f32 %v612_v14, %v557_v36  ;;  %v559_v39 = vpop.f32.mrb[1].mxu0 }
 0x187   :  { %v971_v30 = vmul.f32 -1.442695, %v626_v27  ;;  %v629_v31 = vadd.f32 %v620_v23, %v604_v28  ;;  %v625_v40 = vadd.f32 %v616_v16, %v559_v39  ;;  %v561_v42 = vpop.f32.mrb[2].mxu0  ;;  %v868_v23 = vadd.f32 %v1559_v17, %v1576_v43 }
 0x188   :  { %v627_v44 = vadd.f32 %v612_v14, %v561_v42  ;;  %v563_v45 = vpop.f32.mrb[3].mxu0  ;;  %v992_v55 = vmul.f32 -1.442695, %v624_v38 }
 0x189   :  { %1210 = vpow2.f32 %v971_v30  ;;  %v972_v32 = vmul.f32 -1.442695, %v629_v31  ;;  %v628_v46 = vadd.f32 %v616_v16, %v563_v45  ;;  %v990_v56 = vmul.f32 -1.442695, %v625_v40 }
 0x18a   :  { %v993_v58 = vmul.f32 -1.442695, %v627_v44 }
 0x18b   :  { %1212 = vpow2.f32 %v972_v32  ;;  %v991_v57 = vmul.f32 -1.442695, %v628_v46 }
 0x193   :  { %v1211_v33 = vpop.eup %1210 }
 0x194   :  { %v636_v34 = vadd.f32 1.0, %v1211_v33 }
 0x195   :  { %v1213_v35 = vpop.eup %1212 }
 0x196   :  { %1214 = vrcp.f32 %v636_v34  ;;  %v637_v37 = vadd.f32 1.0, %v1213_v35 }
 0x198   :  { %1216 = vrcp.f32 %v637_v37 }
 0x199   :  { %1218 = vpow2.f32 %v992_v55 }
 0x19a   :  { %1220 = vpow2.f32 %v990_v56 }
 0x19b   :  { %1222 = vpow2.f32 %v991_v57 }
 0x19c   :  { %1224 = vpow2.f32 %v993_v58 }
 0x1a0   :  { %v1215_v47 = vpop.eup %1214 }
 0x1a1   :  { %v661_v49 = vmul.f32 %v1215_v47, %v1557_v15  ;;  %v642_v51 = vmul.f32 %v1215_v47, %v1574_v41 }
 0x1a2   :  { %v1217_v48 = vpop.eup %1216 }
 0x1a3   :  { %v662_v50 = vmul.f32 %v1217_v48, %v1559_v17  ;;  %v643_v52 = vmul.f32 %v1217_v48, %v1576_v43  ;;  %v1219_v59 = vpop.eup %1218 }
 0x1a4   :  { %v1221_v60 = vpop.eup %1220  ;;  %v891_v62 = vadd.f32 1.0, %v1219_v59 }
 0x1a5   :  { %v663_v53 = vpack.c.bf16 %v662_v50, %v661_v49  ;;  %v644_v54 = vpack.c.bf16 %v643_v52, %v642_v51  ;;  %v1223_v61 = vpop.eup %1222  ;;  %v875_v1 = vadd.f32 1.0, %v1221_v60 }
 0x1a6   :  { %v1225_v63 = vpop.eup %1224  ;;  %v876_v2 = vadd.f32 1.0, %v1223_v61  ;;  %1226 = vrcp.f32 %v891_v62 }
 0x1a7   :  { %1087 = vmatmul.mubr.bf16.vlgmr.msra.gmra.mrb[4].mxu0 %v663_v53  ;;  %1107 = vmatmul.mubr.bf16.vlgmr.msra.gmra.mrb[8].mxu1 %v644_v54  ;;  %v892_v9 = vadd.f32 1.0, %v1225_v63  ;;  %1228 = vrcp.f32 %v875_v1 }
 0x1a8   :  { %1230 = vrcp.f32 %v876_v2 }
 0x1b0   :  { %v1227_v19 = vpop.eup %1226 }
 0x1b1   :  { %v1229_v21 = vpop.eup %1228 }
 0x1b2   :  { %v1231_v22 = vpop.eup %1230  ;;  %v881_v0 = vmul.f32 %v1229_v21, %v867_v20 }
 0x1b3   :  { %v882_v28 = vmul.f32 %v1231_v22, %v868_v23 }
 0x27a   :  { %v762_v3 = vpop.f32.mrb[4].mxu0  ;;  %v851_v4 = vpop.f32.mrb[8].mxu1 }
 0x27b   :  { %v852_v6 = vadd.f32 %v851_v4, %v762_v3  ;;  %v1088_v7 = vpop.f32.mrb[5].mxu0  ;;  %v1108_v8 = vpop.f32.mrb[9].mxu1 }
 0x27c   :  { %v765_v10 = vpop.f32.mrb[6].mxu0  ;;  %v854_v11 = vpop.f32.mrb[10].mxu1 }
 0x27d   :  { %v865_v12 = vadd.f32 %v989_v5, %v852_v6  ;;  %v855_v13 = vadd.f32 %v854_v11, %v765_v10  ;;  %v1089_v14 = vpop.f32.mrb[7].mxu0  ;;  %v1109_v16 = vpop.f32.mrb[11].mxu1 }
 0x27f   :  { %1232 = vtanh.f32 %v865_v12  ;;  %v866_v18 = vadd.f32 %v989_v5, %v855_v13 }
 0x280   :  { %1234 = vrcp.f32 %v892_v9 }
 0x281   :  { %1236 = vtanh.f32 %v866_v18 }
 0x289   :  { %v1233_v24 = vpop.eup %1232 }
 0x28a   :  { %v1235_v25 = vpop.eup %1234  ;;  %v897_v26 = vmul.f32 %v1233_v24, %v1227_v19 }
 0x28b   :  { %v1237_v27 = vpop.eup %1236 }
 0x28c   :  { %v898_v29 = vmul.f32 %v1237_v27, %v1235_v25  ;;  %v899_v30 = vadd.f32 %v897_v26, %v881_v0 }
 0x28e   :  { %v900_v31 = vadd.f32 %v898_v29, %v882_v28  ;;  %901 = vst [vmem:[#allocation13] sm:$0xff] %v899_v30 }
 0x290   :  { %902 = vst [vmem:[#allocation13 + $0x8] sm:$0xff] %v900_v31 }
 0x291   :  { %1381 = shalt.err (!%p1378_p10)
}
 0x292   :  { %s1382_s3 = scalar_lea.hbm %s1638_s8, 256 }
 0x293   :  { %p1383_p11 = scmp.ne.s32.totalorder %s1638_s8, %s1382_s3  ;;  %p1386_p12 = scmp.lt.u32.totalorder %s1382_s3, %s1638_s8 }
 0x295   :  { %p1388_p13 = pnand %p1386_p12, %p1383_p11 }
 0x297   :  { %1391 = shalt.err (!%p1388_p13)
}
 0x298   :  { %914 = dma.vmem_to_hbm [thread:$0]  %s909_s18, 256, %s1638_s8, [#allocation4], %s1403_s15, %s1403_s15, %s1404_s16  }
 0x299   :  { %1400 = dma.done.wait [#allocation4], 256  }
 0x29a   :  { %1401 = vsyncadd [#allocation4], 4294967040 }
 0x29b   :  { %918 = vsyncpa [#allocation3], 1 }
 0x29c   :  { %919 = vsyncpa [#allocation6], 1 }
 0x29d   :  { %920 = vsyncpa [#allocation9], 1 }
 0x29e   :  { %921 = vsyncpa [#allocation12], 1 }
 0x29f   :  { %922 = vsyncpa [#allocation4], 1 }

</bundles_post_ra>
